<compile_context>
chip_gen: v7x
topology: tpu7x:2x2x1
jax: 0.10.0
libtpu: 0.0.40
codegen_flags: <defaults>
</compile_context>

<pallas_src>
from functools import partial

import jax
import jax.numpy as jnp
from jax.experimental import pallas as pl
from jax.experimental.pallas import tpu as pltpu


def _round_up(n, m):
    return ((n + m - 1) // m) * m


def _make_disc_kernel(in_dim, b1_row, w2_row, b2_row):
    """Kernel over one batch tile: xc (bm, in_dim), slab (rows, h_dim)."""

    def kernel(xc_ref, w_ref, out_ref):
        w1 = w_ref[0:in_dim, :]                     # (in_dim, h_dim)
        b1 = w_ref[b1_row:b1_row + 1, :]            # (1, h_dim)
        w2 = w_ref[w2_row:w2_row + 1, :]            # (1, h_dim) fc2 weight row
        b2 = w_ref[b2_row:b2_row + 1, 0:1]          # (1, 1)

        # fc1: single K=in_dim MXU pass on the pre-concatenated input.
        h = jnp.dot(xc_ref[...], w1, preferred_element_type=jnp.float32) + b1
        h = jnp.maximum(h, 0.0)                     # ReLU (VPU)

        # fc2: dense (1, h_dim) weight against h.T -> lane-dense (1, bm)
        # logits (no padded (128,1) weight, no masked column store).
        logit = jnp.dot(w2, h.T, preferred_element_type=jnp.float32) + b2
        out_ref[...] = jax.nn.sigmoid(logit)        # (1, bm), EUP exp

    return kernel


def _pack_params(w1, b1, w2, b2):
    """Pack W1/b1/w2/b2 into one (rows, h_dim) f32 slab (one DMA, one ref)."""
    in_dim, h_dim = w1.shape
    b1_row = _round_up(in_dim, 8)       # sublane-aligned row offsets
    w2_row = b1_row + 8
    b2_row = b1_row + 16
    rows = b1_row + 24                  # multiple of 8
    slab = jnp.zeros((rows, h_dim), jnp.float32)
    slab = slab.at[:in_dim, :].set(w1.astype(jnp.float32))
    slab = slab.at[b1_row, :].set(b1.astype(jnp.float32).reshape(h_dim))
    slab = slab.at[w2_row, :].set(w2.astype(jnp.float32).reshape(h_dim))
    slab = slab.at[b2_row, 0].set(b2.astype(jnp.float32).reshape(())[()])
    return slab, b1_row, w2_row, b2_row


@partial(jax.jit, static_argnames=("block_b",))
def discriminator_forward(x, c, params, *, block_b=256):
    """x: (B, x_dim) f32, c: (B, 10) f32 -> (B, 1) f32 (matches PyTorch)."""
    w1, b1, w2, b2 = params
    in_dim, h_dim = w1.shape
    B = x.shape[0]

    # Fold cat([x, c], dim=1) into a single input (done once in the wrapper).
    xc = jnp.concatenate([x.astype(jnp.float32), c.astype(jnp.float32)],
                         axis=1)
    assert xc.shape[1] == in_dim, (xc.shape, in_dim)

    # Batch tiling: block_b is a multiple of 128 so multi-tile grids keep the
    # lane-dense output blocks 128-aligned; small batches collapse to grid=1.
    bm = block_b if B >= block_b else _round_up(B, 8)
    b_pad = _round_up(B, bm)
    if b_pad != B:
        xc = jnp.pad(xc, ((0, b_pad - B), (0, 0)))

    slab, b1_row, w2_row, b2_row = _pack_params(w1, b1, w2, b2)
    kernel = _make_disc_kernel(in_dim, b1_row, w2_row, b2_row)

    out_1b = pl.pallas_call(
        kernel,
        out_shape=jax.ShapeDtypeStruct((1, b_pad), jnp.float32),
        grid=(b_pad // bm,),
        in_specs=[
            pl.BlockSpec((bm, in_dim), lambda i: (i, 0)),   # batch tiles
            pl.BlockSpec(slab.shape, lambda i: (0, 0)),     # resident weights
        ],
        out_specs=pl.BlockSpec((1, bm), lambda i: (0, i)),  # lane-dense logits
        compiler_params=pltpu.CompilerParams(
            dimension_semantics=("parallel",)),
    )(xc, slab)

    # Back to the PyTorch (B, 1) layout; drop batch padding.
    return out_1b[0, :B].reshape(B, 1)


def init_params(key, x_dim, h_dim, c_dim=10):
    """xavier_normal_ weights, zero biases (as in xavier_init)."""
    k1, k2 = jax.random.split(key)
    in_dim = x_dim + c_dim
    std1 = (2.0 / (in_dim + h_dim)) ** 0.5
    std2 = (2.0 / (h_dim + 1)) ** 0.5
    w1 = jax.random.normal(k1, (in_dim, h_dim), jnp.float32) * std1   # (in, h)
    w2 = jax.random.normal(k2, (1, h_dim), jnp.float32) * std2        # fc2.weight
    b1 = jnp.zeros((h_dim,), jnp.float32)
    b2 = jnp.zeros((1,), jnp.float32)
    return (w1, b1, w2, b2)


def reference_forward(x, c, params):
    """Plain-JAX reference replicating the PyTorch forward exactly."""
    w1, b1, w2, b2 = params
    inputs = jnp.concatenate([x, c], axis=1)
    h = jax.nn.relu(inputs @ w1 + b1[None, :])
    return jax.nn.sigmoid(h @ w2.T + b2[None, :])


if __name__ == "__main__":
    B, X_DIM, C_DIM, H_DIM = 8, 54, 10, 128

    key = jax.random.PRNGKey(0)
    kx, kc, kp = jax.random.split(key, 3)
    x = jax.random.normal(kx, (B, X_DIM), jnp.float32)
    labels = jax.random.randint(kc, (B,), 0, C_DIM)
    c = jax.nn.one_hot(labels, C_DIM, dtype=jnp.float32)
    params = init_params(kp, X_DIM, H_DIM, C_DIM)

    out = jax.block_until_ready(discriminator_forward(x, c, params))
    ref = reference_forward(x, c, params)
    assert out.shape == (B, 1), out.shape
    assert jnp.allclose(out, ref, atol=1e-4, rtol=1e-4), (
        f"max abs err {float(jnp.max(jnp.abs(out - ref)))}")

    # Exercise the multi-tile grid / lane-dense store path (B > block_b).
    B2 = 600
    k2x, k2c = jax.random.split(jax.random.PRNGKey(1))
    x2 = jax.random.normal(k2x, (B2, X_DIM), jnp.float32)
    c2 = jax.nn.one_hot(jax.random.randint(k2c, (B2,), 0, C_DIM),
                        C_DIM, dtype=jnp.float32)
    out2 = jax.block_until_ready(discriminator_forward(x2, c2, params))
    ref2 = reference_forward(x2, c2, params)
    assert out2.shape == (B2, 1), out2.shape
    assert jnp.allclose(out2, ref2, atol=1e-4, rtol=1e-4), (
        f"max abs err {float(jnp.max(jnp.abs(out2 - ref2)))}")

    print("KERNEL_OK")
</pallas_src>

<mosaic_0001>
module attributes {stable_mosaic.version = 11 : i64} {
  func.func @kernel(%arg0: i32, %arg1: memref<8x64xf32, #tpu.memory_space<vmem>>, %arg2: memref<88x128xf32, #tpu.memory_space<vmem>>, %arg3: memref<1x8xf32, #tpu.memory_space<vmem>>) attributes {dimension_semantics = [#tpu.dimension_semantics<parallel>], iteration_bounds = array<i64: 1>, scalar_prefetch = 0 : i64, scratch_operands = 0 : i64, tpu.core_type = #tpu.core_type<tc>, window_params = [{transform_indices = @transform_0, window_bounds = array<i64: 8, 64>}, {pipeline_mode = #tpu.pipeline_mode<synchronous>, transform_indices = @transform_1, window_bounds = array<i64: 88, 128>}, {transform_indices = @transform_2, window_bounds = array<i64: 1, 8>}]} {
    %c0 = arith.constant 0 : index
    %c0_0 = arith.constant 0 : index
    %0 = vector.load %arg2[%c0, %c0_0] : memref<88x128xf32, #tpu.memory_space<vmem>>, vector<64x128xf32>
    %c64 = arith.constant 64 : index
    %c0_1 = arith.constant 0 : index
    %1 = vector.load %arg2[%c64, %c0_1] : memref<88x128xf32, #tpu.memory_space<vmem>>, vector<1x128xf32>
    %c72 = arith.constant 72 : index
    %c0_2 = arith.constant 0 : index
    %2 = vector.load %arg2[%c72, %c0_2] : memref<88x128xf32, #tpu.memory_space<vmem>>, vector<1x128xf32>
    %c80 = arith.constant 80 : index
    %c0_3 = arith.constant 0 : index
    %3 = vector.load %arg2[%c80, %c0_3] : memref<88x128xf32, #tpu.memory_space<vmem>>, vector<1x1xf32>
    %c0_4 = arith.constant 0 : index
    %c0_5 = arith.constant 0 : index
    %4 = vector.load %arg1[%c0_4, %c0_5] : memref<8x64xf32, #tpu.memory_space<vmem>>, vector<8x64xf32>
    %cst = arith.constant dense<0.000000e+00> : vector<8x128xf32>
    %5 = tpu.matmul %4, %0, %cst {dimension_numbers = #tpu.dot_dimension_numbers<[1], [0], [0], [1], [0, 0, 1, 1], [], []>} : vector<8x64xf32>, vector<64x128xf32>, vector<8x128xf32> -> vector<8x128xf32>
    %6 = vector.broadcast %1 : vector<1x128xf32> to vector<8x128xf32>
    %7 = arith.addf %5, %6 : vector<8x128xf32>
    %cst_6 = arith.constant 0.000000e+00 : f32
    %8 = vector.broadcast %cst_6 : f32 to vector<8x128xf32>
    %9 = arith.maximumf %7, %8 : vector<8x128xf32>
    %10 = tpu.transpose %9, [1, 0] : vector<8x128xf32> -> vector<128x8xf32>
    %cst_7 = arith.constant dense<0.000000e+00> : vector<1x8xf32>
    %11 = tpu.matmul %2, %10, %cst_7 {dimension_numbers = #tpu.dot_dimension_numbers<[1], [0], [0], [1], [0, 0, 1, 1], [], []>} : vector<1x128xf32>, vector<128x8xf32>, vector<1x8xf32> -> vector<1x8xf32>
    %12 = vector.broadcast %3 : vector<1x1xf32> to vector<1x8xf32>
    %13 = arith.addf %11, %12 : vector<1x8xf32>
    %14 = arith.negf %13 : vector<1x8xf32>
    %15 = math.exp %14 : vector<1x8xf32>
    %cst_8 = arith.constant 1.000000e+00 : f32
    %16 = vector.broadcast %cst_8 : f32 to vector<1x8xf32>
    %17 = arith.addf %16, %15 : vector<1x8xf32>
    %18 = arith.divf %16, %17 : vector<1x8xf32>
    %c0_9 = arith.constant 0 : index
    %c0_10 = arith.constant 0 : index
    %19 = vector.load %arg3[%c0_9, %c0_10] : memref<1x8xf32, #tpu.memory_space<vmem>>, vector<1x8xf32>
    tpu.vector_store %arg3[%c0_9, %c0_10], %18 {strides = array<i32>} : memref<1x8xf32, #tpu.memory_space<vmem>>, vector<1x8xf32>,
    return
  }
  func.func @transform_0(%arg0: i32) -> (i32, i32) {
    %c0_i32 = arith.constant 0 : i32
    %c0_i32_0 = arith.constant 0 : i32
    return %arg0, %c0_i32 : i32, i32
  }
  func.func @transform_1(%arg0: i32) -> (i32, i32) {
    %c0_i32 = arith.constant 0 : i32
    %c0_i32_0 = arith.constant 0 : i32
    %c0_i32_1 = arith.constant 0 : i32
    return %c0_i32, %c0_i32_0 : i32, i32
  }
  func.func @transform_2(%arg0: i32) -> (i32, i32) {
    %c0_i32 = arith.constant 0 : i32
    %c0_i32_0 = arith.constant 0 : i32
    return %c0_i32, %arg0 : i32, i32
  }
}

</mosaic_0001>

<bundles_post_ra>
// kernel: discriminator_forward.1
= control target key start
LH: loop header
LB: loop body
LE: loop exit
PB: predicated region body
PF: predicated region fallthrough
CT: control target
= control target key end

     0   :  { %v284_v3 = vmov 0.0|0.0   ;;  %vm285_vm0 = vmmov 0   ;;  %v286_v6 = vmov 0.0   ;;  %s352_s0 = inlined_call_operand.vmem [shape: f32[8,64], index: 0, kind: input, shape index: {}]   ;;  %s353_s1 = inlined_call_operand.vmem [shape: f32[88,128], index: 1, kind: input, shape index: {}]   ;;  %s354_s2 = inlined_call_operand.hbm [shape: f32[1,8], index: 2, kind: output, shape index: {}]  }
   0x1   :  { %v12_v0 = vld [vmem:[%s353_s1] sm:$0xff]  ;;  %v13_v1 = vld [vmem:[%s353_s1 + $0x8] sm:$0xff]  ;;  %v14_v2 = vld [vmem:[%s353_s1 + $0x10] sm:$0xff]  ;;  %238 = vmatprep.subr.bf16.mxu0 %v284_v3  ;;  %230 = vmatprep.mubr.msk.f32.mxu0 %vm285_vm0, %v286_v6 }
   0x2   :  { %v239_v4 = vpack.c.bf16 %v13_v1, %v12_v0  ;;  %v15_v5 = vld [vmem:[%s353_s1 + $0x18] sm:$0xff]  ;;  %233 = vmatprep.subr.mxu1 %v286_v6  ;;  %235 = vmatprep.mubr.msk.f32.mxu1 %vm285_vm0, %v286_v6 }
   0x3   :  { %v242_v7 = vpack.c.bf16 %v15_v5, %v14_v2 }
   0x4   :  { %240 = vmatpush3.bf16.msra.mxu0 %v239_v4 }
   0x5   :  { %7 = vsyncpa [#allocation3], 0  ;;  %241 = vmatprep.subr.bf16.mxu0 %v284_v3  ;;  %v16_v8 = vld [vmem:[%s353_s1 + $0x20] sm:$0xff]  ;;  %v17_v9 = vld [vmem:[%s353_s1 + $0x28] sm:$0xff]  ;;  %vm28_vm1 = vcmask 523264   ;;  %v287_v16 = vmov 0  }
   0x6   :  { %v245_v10 = vpack.c.bf16 %v17_v9, %v16_v8  ;;  %v18_v11 = vld [vmem:[%s353_s1 + $0x30] sm:$0xff]  ;;  %v19_v12 = vld [vmem:[%s353_s1 + $0x38] sm:$0xff]  ;;  %v23_v14 = vld [vmem:[%s352_s0] sm:$0xff]  ;;  %255 = vset.pattern.permute.xlu0 %v287_v16  ;;  %s288_s4 = smov [#allocation2]   ;;  %vm184_vm2 = vcmask 57344  }
   0x7   :  { %v248_v13 = vpack.c.bf16 %v19_v12, %v18_v11  ;;  %v22_v15 = vld [vmem:[%s353_s1 + $0x50] sm:$0x1]  ;;  %v200_v17 = vld [vmem:[%s353_s1 + $0x40] ss:$0 sm:$0xff]  ;;  %v21_v22 = vld [vmem:[%s353_s1 + $0x48] sm:$0x1] }
   0x8   :  { %243 = vmatpush3.bf16.msra.mxu0 %v242_v7  ;;  %105 = vperm.xlu0 %255, %v22_v15   ;;  %s192_s5 = sshll.u32 %s288_s4, 4  ;;  %s193_s5 = int_to_ptr.vmem [resolvable:$true] %s192_s5 }
   0x9   :  { %244 = vmatprep.subr.bf16.mxu0 %v284_v3  ;;  %s260_s6 = scalar_lea.vmem %s193_s5, 16  ;;  %s264_s7 = scalar_lea.vmem %s193_s5, 32 }
   0xa   :  { %p261_p0 = scmp.ne.s32.totalorder %s193_s5, %s260_s6  ;;  %p265_p1 = scmp.lt.s32.totalorder %s193_s5, %s193_s5 }
   0xb   :  { %p266_p2 = scmp.lt.s32.totalorder %s264_s7, %s260_s6 }
   0xc   :  { %246 = vmatpush3.bf16.msra.mxu0 %v245_v10 }
   0xd   :  { %247 = vmatprep.subr.bf16.mxu0 %v284_v3  ;;  %p267_p3 = por %p266_p2, %p265_p1 }
   0xf   :  { %p268_p4 = pnand %p267_p3, %p261_p0 }
  0x10   :  { %249 = vmatpush3.bf16.msra.mxu0 %v248_v13 }
  0x13   :  { %231 = vmatmul.mubr.msk.f32.vlgmr.msra.gmra.mrb[0].mxu0 %vm28_vm1, %v23_v14 }
  0x87   :  { %v106_v23 = vpop.permute.xlu0 %105 }
  0xe6   :  { %v98_v18 = vpop.f32.mrb[0].mxu0 }
  0xe7   :  { %v99_v19 = vadd.f32 %v200_v17, %v98_v18  ;;  %v232_v20 = vpop.f32.mrb[1].mxu0 }
  0xe9   :  { %v102_v21 = vmax.f32 %v99_v19, 0.0 }
  0xeb   :  { %234 = vmatpush3.xpose.msra.mxu1 %v102_v21 }
  0xee   :  { %236 = vmatmul.mubr.f32.vlgmr.msra.gmra.mrb[0].mxu1 %v21_v22 }
 0x1c1   :  { %v174_v24 = vpop.f32.mrb[0].mxu1 }
 0x1c2   :  { %v175_v25 = vadd.f32 %v174_v24, %v106_v23  ;;  %v237_v26 = vpop.f32.mrb[1].mxu1 }
 0x1c4   :  { %v202_v27 = vmul.f32 -1.442695, %v175_v25 }
 0x1c6   :  { %256 = vpow2.f32 %v202_v27 }
 0x1d0   :  { %v257_v28 = vpop.eup %256 }
 0x1d1   :  { %v181_v29 = vadd.f32 1.0, %v257_v28 }
 0x1d3   :  { %258 = vrcp.f32 %v181_v29 }
 0x1dd   :  { %v259_v30 = vpop.eup %258 }
 0x1de   :  { %185 = vst.msk [vmem:[#allocation2] sm:$0x1] %vm184_vm2, %v259_v30 }
 0x1df   :  { %271 = shalt.err (!%p268_p4)
}
 0x1e0   :  { %s272_s9 = scalar_lea.hbm %s354_s2, 16 }
 0x1e1   :  { %p273_p5 = scmp.ne.s32.totalorder %s354_s2, %s272_s9  ;;  %p276_p6 = scmp.lt.u32.totalorder %s272_s9, %s354_s2 }
 0x1e3   :  { %p278_p7 = pnand %p276_p6, %p273_p5 }
 0x1e5   :  { %281 = shalt.err (!%p278_p7)
}
 0x1e6   :  { %195 = dma.vmem_to_hbm [thread:$0]  %s193_s5, 16, %s354_s2, [#allocation3]  }
 0x1e7   :  { %282 = dma.done.wait [#allocation3], 16  }
 0x1e8   :  { %283 = vsyncadd [#allocation3], 4294967280 }
 0x1e9   :  { %199 = vsyncpa [#allocation3], 1 }

</bundles_post_ra>
